<compile_context>
chip_gen: v6e
topology: v6e:2x2x1
jax: 0.10.0
libtpu: 0.0.40
codegen_flags: <defaults>
</compile_context>

<pallas_src>
import functools

import jax
import jax.numpy as jnp
from jax import lax
from jax.experimental import pallas as pl
from jax.experimental.pallas import tpu as pltpu


# ----------------------------------------------------------------------------
# Buffer setup (plain JAX) — mirrors PositionalEncoding.__init__
# ----------------------------------------------------------------------------
def make_positional_encoding(max_len: int, d_model: int) -> jnp.ndarray:
    position = jnp.arange(0, max_len, dtype=jnp.float32)[:, None]            # (L, 1)
    div_term = jnp.exp(
        jnp.arange(0, d_model, 2, dtype=jnp.float32)
        * (-jnp.log(jnp.float32(10000.0)) / d_model)
    )                                                                         # (D/2,)
    pe = jnp.zeros((max_len, d_model), dtype=jnp.float32)
    pe = pe.at[:, 0::2].set(jnp.sin(position * div_term))
    pe = pe.at[:, 1::2].set(jnp.cos(position * div_term))
    # pe.unsqueeze(0).transpose(0, 1) -> (max_len, 1, d_model)
    return pe[:, None, :]


# ----------------------------------------------------------------------------
# Stateless per-element uniform(0,1): murmur3-style integer finalizer over the
# global element index.  Pure int32 VPU ops -> lowers on Mosaic TPU and on the
# CPU/interpret fallback alike.  Per-tile independence comes from including
# the global sequence offset in the counter (no correlated masks across tiles).
# ----------------------------------------------------------------------------
def _uniform_from_index(shape, seed, seq_offset, batch, d_model):
    s = lax.broadcasted_iota(jnp.int32, shape, 0) + seq_offset
    b = lax.broadcasted_iota(jnp.int32, shape, 1)
    d = lax.broadcasted_iota(jnp.int32, shape, 2)
    idx = (s * batch + b) * d_model + d
    x = idx ^ (seed * jnp.int32(-1640531527))                 # 0x9E3779B9
    x = x ^ lax.shift_right_logical(x, jnp.int32(16))
    x = x * jnp.int32(-2048144789)                            # 0x85EBCA6B
    x = x ^ lax.shift_right_logical(x, jnp.int32(13))
    x = x * jnp.int32(-1028477387)                            # 0xC2B2AE35
    x = x ^ lax.shift_right_logical(x, jnp.int32(16))
    # low 24 bits -> uniform float32 in [0, 1)
    return jnp.bitwise_and(x, jnp.int32(0x00FFFFFF)).astype(jnp.float32) * (
        1.0 / float(1 << 24)
    )


# ----------------------------------------------------------------------------
# Pallas kernel: one (TS, B, D) sequence tile per grid step.
# ----------------------------------------------------------------------------
def _pe_dropout_kernel(seed_ref, x_ref, pe_ref, o_ref, *, p, training,
                       tile_seq, batch, d_model):
    x = x_ref[...]                                  # (TS, B, D), compute in x.dtype
    y = x + pe_ref[...].astype(x.dtype)             # (TS, 1, D) broadcasts over batch

    if training and p > 0.0:
        if p >= 1.0:                                # degenerate: drop everything
            o_ref[...] = jnp.zeros_like(o_ref)
            return
        seq_offset = pl.program_id(0) * tile_seq    # global row offset of this tile
        u = _uniform_from_index(y.shape, seed_ref[0], seq_offset, batch, d_model)
        scale = 1.0 / (1.0 - p)                     # compile-time constant
        y = jnp.where(u >= p, y * scale, 0.0)       # single select, no mask round trip

    o_ref[...] = y.astype(o_ref.dtype)


# ----------------------------------------------------------------------------
# Wrapper
# ----------------------------------------------------------------------------
def positional_encoding_forward(x, pe, *, p=0.1, training=True, seed=0,
                                tile_bytes=4 * 1024 * 1024):
    """x: (S, B, D).  pe: (max_len, 1, D).  Returns dropout(x + pe[:S], p)."""
    S, B, D = x.shape
    assert pe.shape[0] >= S and pe.shape[-1] == D
    pe_slice = pe[:S]                               # (S, 1, D) == pe[:x.size(0), :]

    # Tile the sequence axis so one x tile is ~4 MiB; double-buffered x + out
    # (+ tiny pe) stays under the 32 MiB default scoped-VMEM limit on all chips.
    # Trailing block dims (B, D) equal the full array dims, so (8,128) tiling
    # constraints are satisfied even for small demo shapes; for best perf D
    # should be a multiple of 128 (true for real transformer widths).
    bytes_per_row = B * D * x.dtype.itemsize
    ts = max(1, int(tile_bytes // bytes_per_row))
    if ts >= 8:
        ts -= ts % 8
    ts = min(S, ts)
    num_tiles = pl.cdiv(S, ts)

    seed_arr = jnp.asarray([seed], dtype=jnp.int32)
    kernel = functools.partial(
        _pe_dropout_kernel, p=float(p), training=bool(training),
        tile_seq=ts, batch=B, d_model=D,
    )

    return pl.pallas_call(
        kernel,
        out_shape=jax.ShapeDtypeStruct(x.shape, x.dtype),
        grid=(num_tiles,),
        in_specs=[
            pl.BlockSpec(memory_space=pltpu.MemorySpace.SMEM),      # seed scalar
            pl.BlockSpec((ts, B, D), lambda i: (i, 0, 0)),          # x tile
            pl.BlockSpec((ts, 1, D), lambda i: (i, 0, 0)),          # pe tile
        ],
        out_specs=pl.BlockSpec((ts, B, D), lambda i: (i, 0, 0)),
        compiler_params=pltpu.CompilerParams(
            dimension_semantics=("parallel",),      # lets v7x split the grid over 2 TCs
        ),
    )(seed_arr, x, pe_slice)


if __name__ == "__main__":
    # Small shapes consistent with the module's forward: (seq, batch, d_model)
    SEQ, BATCH, D_MODEL, MAX_LEN = 8, 2, 32, 64
    DROPOUT_P = 0.1

    key = jax.random.PRNGKey(0)
    x = jax.random.normal(key, (SEQ, BATCH, D_MODEL), dtype=jnp.float32)
    pe = make_positional_encoding(MAX_LEN, D_MODEL)

    # Eval mode: dropout is identity -> kernel must match x + pe[:S] exactly.
    out_eval = jax.block_until_ready(
        positional_encoding_forward(x, pe, p=DROPOUT_P, training=False))
    ref = x + pe[:SEQ]
    assert out_eval.shape == x.shape and out_eval.dtype == x.dtype
    assert jnp.allclose(out_eval, ref, atol=1e-6), "eval-mode mismatch"

    # Train mode: every element is either 0 (dropped) or (x+pe)/(1-p).
    out_train = jax.block_until_ready(
        positional_encoding_forward(x, pe, p=DROPOUT_P, training=True, seed=1234))
    assert out_train.shape == x.shape and out_train.dtype == x.dtype
    ref_scaled = ref / (1.0 - DROPOUT_P)
    ok = jnp.isclose(out_train, ref_scaled, rtol=1e-5, atol=1e-5) | (out_train == 0.0)
    assert bool(jnp.all(ok)), "train-mode dropout values inconsistent"

    print("KERNEL_OK")
</pallas_src>

<mosaic_0001>
module attributes {stable_mosaic.version = 11 : i64} {
  func.func @_pe_dropout_kernel(%arg0: i32, %arg1: memref<1xi32, #tpu.memory_space<smem>>, %arg2: memref<8x2x32xf32, #tpu.memory_space<vmem>>, %arg3: memref<8x1x32xf32, #tpu.memory_space<vmem>>, %arg4: memref<8x2x32xf32, #tpu.memory_space<vmem>>) attributes {dimension_semantics = [#tpu.dimension_semantics<parallel>], iteration_bounds = array<i64: 1>, scalar_prefetch = 0 : i64, scratch_operands = 0 : i64, tpu.core_type = #tpu.core_type<tc>, window_params = [{transform_indices = @transform_0, window_bounds = array<i64: 1>}, {transform_indices = @transform_1, window_bounds = array<i64: 8, 2, 32>}, {transform_indices = @transform_2, window_bounds = array<i64: 8, 1, 32>}, {transform_indices = @transform_3, window_bounds = array<i64: 8, 2, 32>}]} {
    %c0 = arith.constant 0 : index
    %c0_0 = arith.constant 0 : index
    %c0_1 = arith.constant 0 : index
    %0 = vector.load %arg2[%c0, %c0_0, %c0_1] : memref<8x2x32xf32, #tpu.memory_space<vmem>>, vector<8x2x32xf32>
    %c0_2 = arith.constant 0 : index
    %c0_3 = arith.constant 0 : index
    %c0_4 = arith.constant 0 : index
    %1 = vector.load %arg3[%c0_2, %c0_3, %c0_4] : memref<8x1x32xf32, #tpu.memory_space<vmem>>, vector<8x1x32xf32>
    %2 = vector.broadcast %1 : vector<8x1x32xf32> to vector<8x2x32xf32>
    %3 = arith.addf %0, %2 : vector<8x2x32xf32>
    %c0_5 = arith.constant 0 : index
    %c0_6 = arith.constant 0 : index
    %c0_7 = arith.constant 0 : index
    %4 = vector.load %arg4[%c0_5, %c0_6, %c0_7] : memref<8x2x32xf32, #tpu.memory_space<vmem>>, vector<8x2x32xf32>
    tpu.vector_store %arg4[%c0_5, %c0_6, %c0_7], %3 {strides = array<i32>} : memref<8x2x32xf32, #tpu.memory_space<vmem>>, vector<8x2x32xf32>,
    return
  }
  func.func @transform_0(%arg0: i32) -> i32 {
    %c0_i32 = arith.constant 0 : i32
    %c0_i32_0 = arith.constant 0 : i32
    return %c0_i32 : i32
  }
  func.func @transform_1(%arg0: i32) -> (i32, i32, i32) {
    %c0_i32 = arith.constant 0 : i32
    %c0_i32_0 = arith.constant 0 : i32
    %c0_i32_1 = arith.constant 0 : i32
    return %arg0, %c0_i32, %c0_i32_0 : i32, i32, i32
  }
  func.func @transform_2(%arg0: i32) -> (i32, i32, i32) {
    %c0_i32 = arith.constant 0 : i32
    %c0_i32_0 = arith.constant 0 : i32
    %c0_i32_1 = arith.constant 0 : i32
    return %arg0, %c0_i32, %c0_i32_0 : i32, i32, i32
  }
  func.func @transform_3(%arg0: i32) -> (i32, i32, i32) {
    %c0_i32 = arith.constant 0 : i32
    %c0_i32_0 = arith.constant 0 : i32
    %c0_i32_1 = arith.constant 0 : i32
    return %arg0, %c0_i32, %c0_i32_0 : i32, i32, i32
  }
}

</mosaic_0001>

<bundles_post_ra>
// kernel: tpu_custom_call.1
= control target key start
LH: loop header
LB: loop body
LE: loop exit
PB: predicated region body
PF: predicated region fallthrough
CT: control target
= control target key end

     0   :  { %9 = vsyncpa [#allocation4], 0  ;;  %s277_s0 = inlined_call_operand.<no memory space> [shape: s32[1], index: 0, kind: input, shape index: {}]   ;;  %s278_s1 = inlined_call_operand.hbm [shape: f32[8,2,32], index: 1, kind: input, shape index: {}]   ;;  %s279_s2 = inlined_call_operand.hbm [shape: f32[8,1,32], index: 2, kind: input, shape index: {}]   ;;  %s280_s3 = inlined_call_operand.hbm [shape: f32[8,2,32], index: 3, kind: output, shape index: {}]  }
   0x1   :  { %10 = vsyncpa [#allocation7], 0 }
   0x2   :  { %11 = vsyncpa [#allocation5], 0  ;;  %s224_s12 = smov [#allocation3]  }
   0x3   :  { %s19_s13 = sshll.u32 %s224_s12, 4  ;;  %s20_s13 = int_to_ptr.vmem [resolvable:$true] %s19_s13 }
   0x4   :  { %s166_s14 = scalar_lea.vmem %s20_s13, 256  ;;  %p171_p1 = scmp.lt.s32.totalorder %s20_s13, %s20_s13 }
   0x5   :  { %p167_p0 = scmp.ne.s32.totalorder %s20_s13, %s166_s14  ;;  %p172_p2 = scmp.lt.s32.totalorder %s166_s14, %s166_s14 }
   0x7   :  { %p173_p3 = por %p172_p2, %p171_p1 }
   0x9   :  { %p174_p4 = pnand %p173_p3, %p167_p0 }
   0xb   :  { %177 = shalt.err (!%p174_p4)
}
   0xc   :  { %s225_s0 = smov 32   ;;  %s226_s15 = smov 2  }
   0xd   :  { %25 = dma.hbm_to_vmem [thread:$0]  %s278_s1, 256, %s20_s13, [#allocation4], %s225_s0, %s225_s0, %s226_s15  }
   0xe   :  { %s227_s18 = smov [#allocation6]  }
   0xf   :  { %s31_s19 = sshll.u32 %s227_s18, 4  ;;  %s32_s19 = int_to_ptr.vmem [resolvable:$true] %s31_s19 }
  0x10   :  { %s186_s20 = scalar_lea.vmem %s32_s19, 128  ;;  %p191_p6 = scmp.lt.s32.totalorder %s32_s19, %s32_s19 }
  0x11   :  { %p187_p5 = scmp.ne.s32.totalorder %s32_s19, %s186_s20  ;;  %p192_p7 = scmp.lt.s32.totalorder %s186_s20, %s186_s20 }
  0x13   :  { %p193_p8 = por %p192_p7, %p191_p6 }
  0x15   :  { %p194_p9 = pnand %p193_p8, %p187_p5 }
  0x17   :  { %197 = shalt.err (!%p194_p9)
}
  0x18   :  { %s228_s21 = smov 16   ;;  %s229_s22 = smov 1  }
  0x19   :  { %37 = dma.hbm_to_vmem [thread:$0]  %s279_s2, 128, %s32_s19, [#allocation7], %s228_s21, %s228_s21, %s229_s22  }
  0x1a   :  { %218 = dma.done.wait [#allocation4], 256  }
  0x1b   :  { %219 = vsyncadd [#allocation4], 4294967040 }
  0x1c   :  { %220 = dma.done.wait [#allocation7], 128  }
  0x1d   :  { %221 = vsyncadd [#allocation7], 4294967168  ;;  %vm116_vm0 = vcmask 254976   ;;  %s230_s1 = smov [#allocation8]   ;;  %v44_v0 = vld [vmem:[#allocation3] sm:$0x3] }
  0x1e   :  { %s260_s25 = sshll.u32 %s230_s1, 4  ;;  %v143_v1 = vld [vmem:[#allocation6] ss:$0 sm:$0xff]  ;;  %v45_v2 = vld [vmem:[#allocation3 + $0x2] sm:$0x3]  ;;  %s131_s25 = int_to_ptr.vmem [resolvable:$true] %s260_s25 }
  0x1f   :  { %v108_v3 = vadd.f32 %v143_v1, %v44_v0  ;;  %v144_v4 = vld [vmem:[#allocation6 + $0x1] ss:$0 sm:$0xff]  ;;  %v46_v5 = vld [vmem:[#allocation3 + $0x4] sm:$0x3]  ;;  %v145_v6 = vld [vmem:[#allocation6 + $0x2] ss:$0 sm:$0xff]  ;;  %p203_p11 = scmp.lt.s32.totalorder %s131_s25, %s131_s25 }
  0x20   :  { %v109_v7 = vadd.f32 %v144_v4, %v45_v2  ;;  %v110_v8 = vadd.f32 %v145_v6, %v46_v5  ;;  %v47_v9 = vld [vmem:[#allocation3 + $0x6] sm:$0x3]  ;;  %v146_v10 = vld [vmem:[#allocation6 + $0x3] ss:$0 sm:$0xff]  ;;  %v48_v11 = vld [vmem:[#allocation3 + $0x8] sm:$0x3] }
  0x21   :  { %117 = vst.msk [vmem:[#allocation8] sm:$0x3] %vm116_vm0, %v108_v3  ;;  %v111_v12 = vadd.f32 %v146_v10, %v47_v9  ;;  %v147_v13 = vld [vmem:[#allocation6 + $0x4] ss:$0 sm:$0xff]  ;;  %v49_v14 = vld [vmem:[#allocation3 + $0xa] sm:$0x3] }
  0x22   :  { %v148_v15 = vld [vmem:[#allocation6 + $0x5] ss:$0 sm:$0xff]  ;;  %118 = vst.msk [vmem:[#allocation8 + $0x2] sm:$0x3] %vm116_vm0, %v109_v7  ;;  %119 = vst.msk [vmem:[#allocation8 + $0x4] sm:$0x3] %vm116_vm0, %v110_v8  ;;  %v112_v16 = vadd.f32 %v147_v13, %v48_v11 }
  0x23   :  { %v113_v17 = vadd.f32 %v148_v15, %v49_v14  ;;  %v50_v18 = vld [vmem:[#allocation3 + $0xc] sm:$0x3]  ;;  %v149_v19 = vld [vmem:[#allocation6 + $0x6] ss:$0 sm:$0xff]  ;;  %v51_v20 = vld [vmem:[#allocation3 + $0xe] sm:$0x3] }
  0x24   :  { %120 = vst.msk [vmem:[#allocation8 + $0x6] sm:$0x3] %vm116_vm0, %v111_v12  ;;  %v114_v21 = vadd.f32 %v149_v19, %v50_v18  ;;  %v150_v22 = vld [vmem:[#allocation6 + $0x7] ss:$0 sm:$0xff]  ;;  %121 = vst.msk [vmem:[#allocation8 + $0x8] sm:$0x3] %vm116_vm0, %v112_v16 }
  0x25   :  { %122 = vst.msk [vmem:[#allocation8 + $0xa] sm:$0x3] %vm116_vm0, %v113_v17  ;;  %v115_v23 = vadd.f32 %v150_v22, %v51_v20  ;;  %s198_s2 = scalar_lea.vmem %s131_s25, 256 }
  0x26   :  { %123 = vst.msk [vmem:[#allocation8 + $0xc] sm:$0x3] %vm116_vm0, %v114_v21  ;;  %p199_p10 = scmp.ne.s32.totalorder %s131_s25, %s198_s2  ;;  %p204_p12 = scmp.lt.s32.totalorder %s198_s2, %s198_s2 }
  0x27   :  { %124 = vst.msk [vmem:[#allocation8 + $0xe] sm:$0x3] %vm116_vm0, %v115_v23 }
  0x28   :  { %p205_p13 = por %p204_p12, %p203_p11 }
  0x2a   :  { %p206_p0 = pnand %p205_p13, %p199_p10 }
  0x2c   :  { %209 = shalt.err (!%p206_p0)
}
  0x2d   :  { %136 = dma.vmem_to_hbm [thread:$0]  %s131_s25, 256, %s280_s3, [#allocation5], %s225_s0, %s225_s0, %s226_s15  }
  0x2e   :  { %222 = dma.done.wait [#allocation5], 256  }
  0x2f   :  { %223 = vsyncadd [#allocation5], 4294967040 }
  0x30   :  { %140 = vsyncpa [#allocation4], 1 }
  0x31   :  { %141 = vsyncpa [#allocation7], 1 }
  0x32   :  { %142 = vsyncpa [#allocation5], 1 }

</bundles_post_ra>
